<compile_context>
chip_gen: v7x
topology: tpu7x:2x2x1
jax: 0.10.0
libtpu: 0.0.40
codegen_flags: <defaults>
</compile_context>

<pallas_src>
import numpy as np
import jax
import jax.numpy as jnp
from jax.experimental import pallas as pl
from jax.experimental.pallas import tpu as pltpu

# ---- module hyper-parameters (DeformableAttention1D defaults, scaled down) -------------------
B = 2
N = 16                           # sequence length
DIM = 16                         # model dim
HEADS = 4
DIM_HEAD = 8
OFFSET_GROUPS = HEADS            # default(offset_groups, heads)
DOWNSAMPLE = 4                   # downsample_factor
OFFSET_KS = 6                    # offset_kernel_size
OFFSET_SCALE = float(DOWNSAMPLE) # default(offset_scale, downsample_factor)
INNER = HEADS * DIM_HEAD         # inner_dim
OFFSET_DIMS = INNER // OFFSET_GROUPS
DG = DIM // OFFSET_GROUPS        # per-group channels of dim-sized tensors
PAD = (OFFSET_KS - DOWNSAMPLE) // 2
NDS = (N + 2 * PAD - OFFSET_KS) // DOWNSAMPLE + 1   # downsampled (offset / key) length
SCALE = DIM_HEAD ** -0.5
GN = OFFSET_GROUPS * NDS         # packed key/value width (= HEADS * NDS here)

# The block-diagonal packing below identifies attention heads with offset groups
# (module default: offset_groups = heads).
assert HEADS == OFFSET_GROUPS
assert INNER % OFFSET_GROUPS == 0 and DIM % OFFSET_GROUPS == 0 and (2 * DIM) % OFFSET_GROUPS == 0


# =============================== in-kernel helpers ============================================

def _erf_approx(x):
    # Abramowitz & Stegun 7.1.26 rational approximation, |err| <= 1.5e-7 (f32-exact enough).
    # TODO(synk): exact erf (nn.GELU default) replaced by this approximation because erf
    # lowering inside a Mosaic kernel is not guaranteed; error is far below test tolerance.
    a1, a2, a3, a4, a5 = 0.254829592, -0.284496736, 1.421413741, -1.453152027, 1.061405429
    p = 0.3275911
    ax = jnp.abs(x)
    t = 1.0 / (1.0 + p * ax)
    poly = ((((a5 * t + a4) * t + a3) * t + a2) * t + a1) * t
    y = 1.0 - poly * jnp.exp(-ax * ax)
    return jnp.where(x < 0.0, -y, y)


def _gelu_exact(x):
    return 0.5 * x * (1.0 + _erf_approx(x * 0.7071067811865476))


# =============================== fused Pallas kernel ==========================================

def _fused_kernel(cat_ref, prev_ref, wqT_ref, rall_ref, w1big_ref, boff1_ref,
                  w2sel_ref, mcol_ref, wk_ref, maskkv_ref, seg_ref, wvo_ref,
                  bout_ref, out_ref, wb_sc):
    f32 = jnp.float32

    # ---- to_q for the whole batch (grouped 1x1 conv as a dense block-diagonal matmul) -------
    # q_all[(b n), o] = sum_i cat[(b n), i] * Wq[o, i]
    q_all = jnp.dot(cat_ref[...], wqT_ref[...], preferred_element_type=f32)   # (B*N, INNER)

    # ---- offset subnet: depthwise strided conv packed into one tap-selection matmul ---------
    # taps[(k b m), o] = q[b, o, m*DS + k - PAD]   (zero outside [0, N))
    taps = jnp.dot(rall_ref[...], q_all, preferred_element_type=f32)          # (KS*B*NDS, INNER)
    prod = taps * w1big_ref[...]                                              # * w_off1[c(o), k]
    conv = jnp.zeros((B * NDS, INNER), f32)
    for k in range(OFFSET_KS):                                                # 6 aligned (8,32) FMAs
        conv = conv + prod[k * (B * NDS):(k + 1) * (B * NDS), :]
    conv = conv + boff1_ref[...]                                              # depthwise conv bias
    geo = _gelu_exact(conv)                                                   # nn.GELU()
    # Conv1d(offset_dims, 1, 1, bias=False) per group, packed as one (INNER, G) matmul.
    off = jnp.dot(geo, w2sel_ref[...], preferred_element_type=f32)            # (B*NDS, G)
    off = jnp.tanh(off) * OFFSET_SCALE                                        # Tanh(), Scale()

    # vgrid / normalize_grid / grid_sample(align_corners=False) source coordinate.
    # TODO(synk): normalize_grid / grid_sample_1d helpers are not in the spec; this follows
    # the lucidrains 1-D convention (normalize over the downsampled length NDS).
    vgrid = mcol_ref[...] + off                                               # grid + offsets
    vgrid_scaled = 2.0 * vgrid / float(max(NDS - 1, 1)) - 1.0
    src = ((vgrid_scaled + 1.0) * N - 1.0) * 0.5                              # (B*NDS, G)

    jrow = jax.lax.broadcasted_iota(jnp.int32, (1, N), 1).astype(f32)         # (1, N)
    maskkv = maskkv_ref[...]
    wk_s = wk_ref[...]
    seg = seg_ref[...]
    wvo = wvo_ref[...]
    bout = bout_ref[...]

    # ---- per batch element: sampling + block-diagonal k/v + packed multi-head attention -----
    for b in range(B):                                                        # B=2, static unroll
        q_b = q_all[b * N:(b + 1) * N, :]                                     # (N, INNER)
        prev_b = prev_ref[b * N:(b + 1) * N, :]                               # (N, DIM)

        # bilinear sampling weights, one (NDS, N) block per offset group, assembled in VMEM.
        for g in range(OFFSET_GROUPS):
            src_col = src[b * NDS:(b + 1) * NDS, g:g + 1]                     # (NDS, 1)
            wb_sc[g * NDS:(g + 1) * NDS, :] = jnp.maximum(
                0.0, 1.0 - jnp.abs(src_col - jrow))                           # zeros padding
        wb = wb_sc[...]                                                       # (G*NDS, N)

        # grid_sample_1d of grouped prev_x; mask keeps the per-group block-diagonal structure.
        kv_t = jnp.dot(wb, prev_b, preferred_element_type=f32) * maskkv       # (G*NDS, DIM)
        kv = kv_t.T                                                           # (DIM, G*NDS)

        # to_k (scale folded in) -> block-diagonal K with one (DIM_HEAD, NDS) block per head.
        k_bd = jnp.dot(wk_s, kv, preferred_element_type=f32)                  # (INNER, G*NDS)
        # packed per-head similarity: column segment h*NDS..(h+1)*NDS is head h.
        sim = jnp.dot(q_b, k_bd, preferred_element_type=f32)                  # (N, H*NDS)

        # per-head softmax in one pass: any per-row shift is valid, use the row max;
        # per-head denominators via one matmul with the 0/1 segment matrix.
        e = jnp.exp(sim - jnp.max(sim, axis=-1, keepdims=True))
        denom = jnp.dot(e, seg, preferred_element_type=f32)                   # (N, H*NDS)
        att = e * pl.reciprocal(denom, approx=True)                           # dropout(p=0) == id

        # out = att @ V_bd^T @ Wout^T  ==  att @ kv_t @ (Wv^T Wout^T)   (to_v + to_out fused)
        wkv = jnp.dot(att, kv_t, preferred_element_type=f32)                  # (N, DIM)
        out_ref[b * N:(b + 1) * N, :] = (
            jnp.dot(wkv, wvo, preferred_element_type=f32) + bout)             # + to_out bias


# =============================== public forward ================================================

@jax.jit
def deformable_attention_1d(x, prev_x, c):
    """x, prev_x: (B, N, DIM) -> (B, N, DIM), matching the nn.Module forward."""
    # torch.cat([prev_x, x], dim=1) in channel-major == concat along d in (b, n, d).
    cat = jnp.concatenate([prev_x, x], axis=-1).reshape(B * N, 2 * DIM)
    prev_flat = prev_x.reshape(B * N, DIM)
    out_flat = pl.pallas_call(
        _fused_kernel,
        out_shape=jax.ShapeDtypeStruct((B * N, DIM), jnp.float32),
        scratch_shapes=[pltpu.VMEM((GN, N), jnp.float32)],
    )(cat, prev_flat, c['wqT'], c['rall'], c['w1big'], c['boff1'], c['w2sel'],
      c['m_col'], c['wk_scaled'], c['mask_kv'], c['seg'], c['wvo'], c['bout_row'])
    return out_flat.reshape(B, N, DIM)


# =============================== parameters & preprocessing ====================================

def _densify_grouped_1x1(w_grouped, groups):
    """PyTorch grouped Conv1d kernel-1 weight (out_ch, in_ch//groups) -> dense block-diag."""
    out_ch, icpg = w_grouped.shape
    ocpg = out_ch // groups
    dense = np.zeros((out_ch, icpg * groups), np.float32)
    wg = np.asarray(w_grouped)
    for g in range(groups):
        dense[g * ocpg:(g + 1) * ocpg, g * icpg:(g + 1) * icpg] = wg[g * ocpg:(g + 1) * ocpg]
    return jnp.asarray(dense)


def make_params(key):
    """Raw module weights (grouped-conv layout, like the nn.Module state)."""
    ks = jax.random.split(key, 8)
    return dict(
        wq_g=0.1 * jax.random.normal(ks[0], (INNER, 2 * DIM // OFFSET_GROUPS), jnp.float32),
        wk_g=0.1 * jax.random.normal(ks[1], (INNER, DIM // OFFSET_GROUPS), jnp.float32),
        wv_g=0.1 * jax.random.normal(ks[2], (INNER, DIM // OFFSET_GROUPS), jnp.float32),
        wout=0.1 * jax.random.normal(ks[3], (DIM, INNER), jnp.float32),
        bout=0.1 * jax.random.normal(ks[4], (DIM,), jnp.float32),
        w_off1=0.2 * jax.random.normal(ks[5], (OFFSET_DIMS, OFFSET_KS), jnp.float32),
        b_off1=0.1 * jax.random.normal(ks[6], (OFFSET_DIMS,), jnp.float32),
        w_off2=0.2 * jax.random.normal(ks[7], (OFFSET_DIMS,), jnp.float32),
    )


def prepare_kernel_consts(p):
    """One-time weight preprocessing: densify grouped convs, fold scale, build packing mats."""
    wq_dense = _densify_grouped_1x1(p['wq_g'], OFFSET_GROUPS)            # (INNER, 2*DIM)
    wk_dense = _densify_grouped_1x1(p['wk_g'], OFFSET_GROUPS)            # (INNER, DIM)
    wv_dense = _densify_grouped_1x1(p['wv_g'], OFFSET_GROUPS)            # (INNER, DIM)

    # tap-selection matrix for the depthwise strided offset conv, rows ordered (k, b, m)
    rall = np.zeros((OFFSET_KS * B * NDS, B * N), np.float32)
    for k in range(OFFSET_KS):
        for b in range(B):
            for m in range(NDS):
                j = m * DOWNSAMPLE + k - PAD
                if 0 <= j < N:
                    rall[k * (B * NDS) + b * NDS + m, b * N + j] = 1.0

    # per-(k, o) depthwise weights / bias broadcast over grouped channels o = g*OD + c
    w1_full = jnp.tile(jnp.transpose(p['w_off1']), (1, OFFSET_GROUPS))   # (KS, INNER)
    w1big = jnp.repeat(w1_full, B * NDS, axis=0)                         # (KS*B*NDS, INNER)
    boff1 = jnp.tile(p['b_off1'], OFFSET_GROUPS).reshape(1, INNER)

    # Conv1d(offset_dims, 1, 1) per group as an (INNER, G) block-column matrix
    w2sel = np.zeros((INNER, OFFSET_GROUPS), np.float32)
    w_off2 = np.asarray(p['w_off2'])
    for g in range(OFFSET_GROUPS):
        w2sel[g * OFFSET_DIMS:(g + 1) * OFFSET_DIMS, g] = w_off2

    m_col = (np.arange(B * NDS, dtype=np.float32) % NDS).reshape(-1, 1)  # grid index per row

    # block-diagonal structure masks for the packed kv / per-head softmax
    mask_kv = np.zeros((GN, DIM), np.float32)
    for g in range(OFFSET_GROUPS):
        mask_kv[g * NDS:(g + 1) * NDS, g * DG:(g + 1) * DG] = 1.0
    seg = np.zeros((GN, GN), np.float32)
    for g in range(OFFSET_GROUPS):
        seg[g * NDS:(g + 1) * NDS, g * NDS:(g + 1) * NDS] = 1.0

    return dict(
        wqT=jnp.transpose(wq_dense),                       # (2*DIM, INNER)
        wk_scaled=wk_dense * SCALE,                        # q*scale folded into to_k (exact)
        wvo=jnp.transpose(p['wout'] @ wv_dense),           # to_v followed by to_out, fused
        bout_row=p['bout'].reshape(1, DIM),
        rall=jnp.asarray(rall), w1big=w1big, boff1=boff1,
        w2sel=jnp.asarray(w2sel), m_col=jnp.asarray(m_col),
        mask_kv=jnp.asarray(mask_kv), seg=jnp.asarray(seg),
    )


# =============================== pure-JAX reference (raw grouped weights) =====================

def _grouped_conv1x1(t, w, groups):
    # t: (B, Cin, L); w: (Cout, Cin//groups) -> (B, Cout, L), PyTorch grouped Conv1d k=1.
    cin = t.shape[1]
    cout = w.shape[0]
    ocpg, icpg = cout // groups, cin // groups
    outs = []
    for g in range(groups):
        outs.append(jnp.einsum('oi,bil->bol',
                               w[g * ocpg:(g + 1) * ocpg],
                               t[:, g * icpg:(g + 1) * icpg]))
    return jnp.concatenate(outs, axis=1)


def reference_forward(x, prev_x, p):
    x_cn = jnp.transpose(x, (0, 2, 1))
    prev_cn = jnp.transpose(prev_x, (0, 2, 1))
    cat = jnp.concatenate([prev_cn, x_cn], axis=1)
    q = _grouped_conv1x1(cat, p['wq_g'], OFFSET_GROUPS)                       # to_q
    gq = q.reshape(B, OFFSET_GROUPS, OFFSET_DIMS, N).reshape(B * OFFSET_GROUPS, OFFSET_DIMS, N)
    xp = jnp.pad(gq, ((0, 0), (0, 0), (PAD, PAD)))
    idx = np.arange(NDS)[:, None] * DOWNSAMPLE + np.arange(OFFSET_KS)[None, :]
    windows = xp[:, :, idx]                                                   # (BG, C, NDS, KS)
    y = jnp.einsum('bcnk,ck->bcn', windows, p['w_off1']) + p['b_off1'][None, :, None]
    y = jax.nn.gelu(y, approximate=False)
    off = jnp.einsum('bcn,c->bn', y, p['w_off2'])
    off = jnp.tanh(off) * OFFSET_SCALE
    grid = jnp.arange(NDS, dtype=jnp.float32)
    vgrid = grid[None, :] + off
    vgs = 2.0 * vgrid / max(NDS - 1, 1) - 1.0
    src = ((vgs + 1.0) * N - 1.0) / 2.0
    j = jnp.arange(N, dtype=jnp.float32)
    w = jnp.maximum(0.0, 1.0 - jnp.abs(src[:, :, None] - j[None, None, :]))   # (BG, NDS, N)
    prev_g = prev_cn.reshape(B, OFFSET_GROUPS, DG, N).reshape(B * OFFSET_GROUPS, DG, N)
    kv = jnp.einsum('bdn,bmn->bdm', prev_g, w).reshape(B, DIM, NDS)
    k = _grouped_conv1x1(kv, p['wk_g'], OFFSET_GROUPS)
    v = _grouped_conv1x1(kv, p['wv_g'], OFFSET_GROUPS)
    qs = (q * SCALE).reshape(B, HEADS, DIM_HEAD, N)
    kh = k.reshape(B, HEADS, DIM_HEAD, NDS)
    vh = v.reshape(B, HEADS, DIM_HEAD, NDS)
    sim = jnp.einsum('bhdi,bhdj->bhij', qs, kh)
    att = jax.nn.softmax(sim, axis=-1)
    o = jnp.einsum('bhij,bhdj->bhdi', att, vh).reshape(B, INNER, N)
    out = jnp.einsum('od,bdn->bon', p['wout'], o) + p['bout'][None, :, None]
    return jnp.transpose(out, (0, 2, 1))


# =============================== main ==========================================================

if __name__ == "__main__":
    key = jax.random.PRNGKey(0)
    kx, kp, kw = jax.random.split(key, 3)
    x = jax.random.normal(kx, (B, N, DIM), jnp.float32)
    prev_x = jax.random.normal(kp, (B, N, DIM), jnp.float32)

    raw = make_params(kw)
    consts = prepare_kernel_consts(raw)

    out = jax.block_until_ready(deformable_attention_1d(x, prev_x, consts))
    assert out.shape == (B, N, DIM) and out.dtype == jnp.float32

    ref = jax.block_until_ready(reference_forward(x, prev_x, raw))
    np.testing.assert_allclose(np.asarray(out), np.asarray(ref), rtol=1e-2, atol=2e-3)

    print("KERNEL_OK")
</pallas_src>

<mosaic_0001>
module attributes {stable_mosaic.version = 11 : i64} {
  func.func @_fused_kernel(%arg0: memref<32x32xf32, #tpu.memory_space<vmem>>, %arg1: memref<32x16xf32, #tpu.memory_space<vmem>>, %arg2: memref<32x32xf32, #tpu.memory_space<vmem>>, %arg3: memref<48x32xf32, #tpu.memory_space<vmem>>, %arg4: memref<48x32xf32, #tpu.memory_space<vmem>>, %arg5: memref<1x32xf32, #tpu.memory_space<vmem>>, %arg6: memref<32x4xf32, #tpu.memory_space<vmem>>, %arg7: memref<8x1xf32, #tpu.memory_space<vmem>>, %arg8: memref<32x16xf32, #tpu.memory_space<vmem>>, %arg9: memref<16x16xf32, #tpu.memory_space<vmem>>, %arg10: memref<16x16xf32, #tpu.memory_space<vmem>>, %arg11: memref<16x16xf32, #tpu.memory_space<vmem>>, %arg12: memref<1x16xf32, #tpu.memory_space<vmem>>, %arg13: memref<32x16xf32, #tpu.memory_space<vmem>>, %arg14: memref<16x16xf32, #tpu.memory_space<vmem>>) attributes {dimension_semantics = [], scalar_prefetch = 0 : i64, scratch_operands = 1 : i64, tpu.core_type = #tpu.core_type<tc>} {
    %c0 = arith.constant 0 : index
    %c0_0 = arith.constant 0 : index
    %0 = vector.load %arg0[%c0, %c0_0] : memref<32x32xf32, #tpu.memory_space<vmem>>, vector<32x32xf32>
    %c0_1 = arith.constant 0 : index
    %c0_2 = arith.constant 0 : index
    %1 = vector.load %arg2[%c0_1, %c0_2] : memref<32x32xf32, #tpu.memory_space<vmem>>, vector<32x32xf32>
    %cst = arith.constant dense<0.000000e+00> : vector<32x32xf32>
    %2 = tpu.matmul %0, %1, %cst {dimension_numbers = #tpu.dot_dimension_numbers<[1], [0], [0], [1], [0, 0, 1, 1], [], []>} : vector<32x32xf32>, vector<32x32xf32>, vector<32x32xf32> -> vector<32x32xf32>
    %c0_3 = arith.constant 0 : index
    %c0_4 = arith.constant 0 : index
    %3 = vector.load %arg3[%c0_3, %c0_4] : memref<48x32xf32, #tpu.memory_space<vmem>>, vector<48x32xf32>
    %cst_5 = arith.constant dense<0.000000e+00> : vector<48x32xf32>
    %4 = tpu.matmul %3, %2, %cst_5 {dimension_numbers = #tpu.dot_dimension_numbers<[1], [0], [0], [1], [0, 0, 1, 1], [], []>} : vector<48x32xf32>, vector<32x32xf32>, vector<48x32xf32> -> vector<48x32xf32>
    %c0_6 = arith.constant 0 : index
    %c0_7 = arith.constant 0 : index
    %5 = vector.load %arg4[%c0_6, %c0_7] : memref<48x32xf32, #tpu.memory_space<vmem>>, vector<48x32xf32>
    %6 = arith.mulf %4, %5 : vector<48x32xf32>
    %cst_8 = arith.constant 0.000000e+00 : f32
    %7 = vector.broadcast %cst_8 : f32 to vector<8x32xf32>
    %8 = vector.extract_strided_slice %6 {offsets = [0, 0], sizes = [8, 32], strides = [1, 1]} : vector<48x32xf32> to vector<8x32xf32>
    %9 = arith.addf %7, %8 : vector<8x32xf32>
    %10 = vector.extract_strided_slice %6 {offsets = [8, 0], sizes = [8, 32], strides = [1, 1]} : vector<48x32xf32> to vector<8x32xf32>
    %11 = arith.addf %9, %10 : vector<8x32xf32>
    %12 = vector.extract_strided_slice %6 {offsets = [16, 0], sizes = [8, 32], strides = [1, 1]} : vector<48x32xf32> to vector<8x32xf32>
    %13 = arith.addf %11, %12 : vector<8x32xf32>
    %14 = vector.extract_strided_slice %6 {offsets = [24, 0], sizes = [8, 32], strides = [1, 1]} : vector<48x32xf32> to vector<8x32xf32>
    %15 = arith.addf %13, %14 : vector<8x32xf32>
    %16 = vector.extract_strided_slice %6 {offsets = [32, 0], sizes = [8, 32], strides = [1, 1]} : vector<48x32xf32> to vector<8x32xf32>
    %17 = arith.addf %15, %16 : vector<8x32xf32>
    %18 = vector.extract_strided_slice %6 {offsets = [40, 0], sizes = [8, 32], strides = [1, 1]} : vector<48x32xf32> to vector<8x32xf32>
    %19 = arith.addf %17, %18 : vector<8x32xf32>
    %c0_9 = arith.constant 0 : index
    %c0_10 = arith.constant 0 : index
    %20 = vector.load %arg5[%c0_9, %c0_10] : memref<1x32xf32, #tpu.memory_space<vmem>>, vector<1x32xf32>
    %21 = vector.broadcast %20 : vector<1x32xf32> to vector<8x32xf32>
    %22 = arith.addf %19, %21 : vector<8x32xf32>
    %cst_11 = arith.constant 5.000000e-01 : f32
    %23 = vector.broadcast %cst_11 : f32 to vector<8x32xf32>
    %24 = arith.mulf %23, %22 : vector<8x32xf32>
    %cst_12 = arith.constant 0.707106769 : f32
    %25 = vector.broadcast %cst_12 : f32 to vector<8x32xf32>
    %26 = arith.mulf %22, %25 : vector<8x32xf32>
    %27 = math.absf %26 : vector<8x32xf32>
    %cst_13 = arith.constant 0.327591091 : f32
    %28 = vector.broadcast %cst_13 : f32 to vector<8x32xf32>
    %29 = arith.mulf %28, %27 : vector<8x32xf32>
    %cst_14 = arith.constant 1.000000e+00 : f32
    %30 = vector.broadcast %cst_14 : f32 to vector<8x32xf32>
    %31 = arith.addf %30, %29 : vector<8x32xf32>
    %cst_15 = arith.constant 1.000000e+00 : f32
    %32 = vector.broadcast %cst_15 : f32 to vector<8x32xf32>
    %33 = arith.divf %32, %31 : vector<8x32xf32>
    %cst_16 = arith.constant 1.06140542 : f32
    %34 = vector.broadcast %cst_16 : f32 to vector<8x32xf32>
    %35 = arith.mulf %34, %33 : vector<8x32xf32>
    %cst_17 = arith.constant -1.45315206 : f32
    %36 = vector.broadcast %cst_17 : f32 to vector<8x32xf32>
    %37 = arith.addf %35, %36 : vector<8x32xf32>
    %38 = arith.mulf %37, %33 : vector<8x32xf32>
    %cst_18 = arith.constant 1.42141378 : f32
    %39 = vector.broadcast %cst_18 : f32 to vector<8x32xf32>
    %40 = arith.addf %38, %39 : vector<8x32xf32>
    %41 = arith.mulf %40, %33 : vector<8x32xf32>
    %cst_19 = arith.constant -0.284496725 : f32
    %42 = vector.broadcast %cst_19 : f32 to vector<8x32xf32>
    %43 = arith.addf %41, %42 : vector<8x32xf32>
    %44 = arith.mulf %43, %33 : vector<8x32xf32>
    %cst_20 = arith.constant 0.254829586 : f32
    %45 = vector.broadcast %cst_20 : f32 to vector<8x32xf32>
    %46 = arith.addf %44, %45 : vector<8x32xf32>
    %47 = arith.mulf %46, %33 : vector<8x32xf32>
    %cst_21 = arith.constant 0.000000e+00 : f32
    %48 = vector.broadcast %cst_21 : f32 to vector<8x32xf32>
    %49 = arith.subf %48, %27 : vector<8x32xf32>
    %50 = arith.mulf %49, %27 : vector<8x32xf32>
    %51 = math.exp %50 : vector<8x32xf32>
    %52 = arith.mulf %47, %51 : vector<8x32xf32>
    %cst_22 = arith.constant 1.000000e+00 : f32
    %53 = vector.broadcast %cst_22 : f32 to vector<8x32xf32>
    %54 = arith.subf %53, %52 : vector<8x32xf32>
    %cst_23 = arith.constant 0.000000e+00 : f32
    %55 = vector.broadcast %cst_23 : f32 to vector<8x32xf32>
    %56 = arith.cmpf olt, %26, %55 : vector<8x32xf32>
    %cst_24 = arith.constant 0.000000e+00 : f32
    %57 = vector.broadcast %cst_24 : f32 to vector<8x32xf32>
    %58 = arith.subf %57, %54 : vector<8x32xf32>
    %59 = arith.select %56, %58, %54 : vector<8x32xi1>, vector<8x32xf32>
    %cst_25 = arith.constant 1.000000e+00 : f32
    %60 = vector.broadcast %cst_25 : f32 to vector<8x32xf32>
    %61 = arith.addf %60, %59 : vector<8x32xf32>
    %62 = arith.mulf %24, %61 : vector<8x32xf32>
    %c0_26 = arith.constant 0 : index
    %c0_27 = arith.constant 0 : index
    %63 = vector.load %arg6[%c0_26, %c0_27] : memref<32x4xf32, #tpu.memory_space<vmem>>, vector<32x4xf32>
    %cst_28 = arith.constant dense<0.000000e+00> : vector<8x4xf32>
    %64 = tpu.matmul %62, %63, %cst_28 {dimension_numbers = #tpu.dot_dimension_numbers<[1], [0], [0], [1], [0, 0, 1, 1], [], []>} : vector<8x32xf32>, vector<32x4xf32>, vector<8x4xf32> -> vector<8x4xf32>
    %65 = math.tanh %64 : vector<8x4xf32>
    %cst_29 = arith.constant 4.000000e+00 : f32
    %66 = vector.broadcast %cst_29 : f32 to vector<8x4xf32>
    %67 = arith.mulf %65, %66 : vector<8x4xf32>
    %c0_30 = arith.constant 0 : index
    %c0_31 = arith.constant 0 : index
    %68 = vector.load %arg7[%c0_30, %c0_31] : memref<8x1xf32, #tpu.memory_space<vmem>>, vector<8x1xf32>
    %69 = vector.broadcast %68 : vector<8x1xf32> to vector<8x4xf32>
    %70 = arith.addf %69, %67 : vector<8x4xf32>
    %cst_32 = arith.constant 2.000000e+00 : f32
    %71 = vector.broadcast %cst_32 : f32 to vector<8x4xf32>
    %72 = arith.mulf %71, %70 : vector<8x4xf32>
    %cst_33 = arith.constant 3.000000e+00 : f32
    %73 = vector.broadcast %cst_33 : f32 to vector<8x4xf32>
    %74 = arith.divf %72, %73 : vector<8x4xf32>
    %cst_34 = arith.constant 1.000000e+00 : f32
    %75 = vector.broadcast %cst_34 : f32 to vector<8x4xf32>
    %76 = arith.subf %74, %75 : vector<8x4xf32>
    %cst_35 = arith.constant 1.000000e+00 : f32
    %77 = vector.broadcast %cst_35 : f32 to vector<8x4xf32>
    %78 = arith.addf %76, %77 : vector<8x4xf32>
    %cst_36 = arith.constant 1.600000e+01 : f32
    %79 = vector.broadcast %cst_36 : f32 to vector<8x4xf32>
    %80 = arith.mulf %78, %79 : vector<8x4xf32>
    %cst_37 = arith.constant 1.000000e+00 : f32
    %81 = vector.broadcast %cst_37 : f32 to vector<8x4xf32>
    %82 = arith.subf %80, %81 : vector<8x4xf32>
    %cst_38 = arith.constant 5.000000e-01 : f32
    %83 = vector.broadcast %cst_38 : f32 to vector<8x4xf32>
    %84 = arith.mulf %82, %83 : vector<8x4xf32>
    %85 = tpu.iota {dimensions = array<i32: 1>} : vector<1x16xi32>
    %86 = arith.sitofp %85 : vector<1x16xi32> to vector<1x16xf32>
    %c0_39 = arith.constant 0 : index
    %c0_40 = arith.constant 0 : index
    %87 = vector.load %arg9[%c0_39, %c0_40] : memref<16x16xf32, #tpu.memory_space<vmem>>, vector<16x16xf32>
    %c0_41 = arith.constant 0 : index
    %c0_42 = arith.constant 0 : index
    %88 = vector.load %arg8[%c0_41, %c0_42] : memref<32x16xf32, #tpu.memory_space<vmem>>, vector<32x16xf32>
    %c0_43 = arith.constant 0 : index
    %c0_44 = arith.constant 0 : index
    %89 = vector.load %arg10[%c0_43, %c0_44] : memref<16x16xf32, #tpu.memory_space<vmem>>, vector<16x16xf32>
    %c0_45 = arith.constant 0 : index
    %c0_46 = arith.constant 0 : index
    %90 = vector.load %arg11[%c0_45, %c0_46] : memref<16x16xf32, #tpu.memory_space<vmem>>, vector<16x16xf32>
    %c0_47 = arith.constant 0 : index
    %c0_48 = arith.constant 0 : index
    %91 = vector.load %arg12[%c0_47, %c0_48] : memref<1x16xf32, #tpu.memory_space<vmem>>, vector<1x16xf32>
    %92 = vector.extract_strided_slice %2 {offsets = [0, 0], sizes = [16, 32], strides = [1, 1]} : vector<32x32xf32> to vector<16x32xf32>
    %c0_49 = arith.constant 0 : index
    %c0_50 = arith.constant 0 : index
    %93 = vector.load %arg1[%c0_49, %c0_50] : memref<32x16xf32, #tpu.memory_space<vmem>>, vector<16x16xf32>
    %94 = vector.extract_strided_slice %84 {offsets = [0, 0], sizes = [4, 1], strides = [1, 1]} : vector<8x4xf32> to vector<4x1xf32>
    %95 = vector.broadcast %94 : vector<4x1xf32> to vector<4x16xf32>
    %96 = vector.broadcast %86 : vector<1x16xf32> to vector<4x16xf32>
    %97 = arith.subf %95, %96 : vector<4x16xf32>
    %98 = math.absf %97 : vector<4x16xf32>
    %cst_51 = arith.constant 1.000000e+00 : f32
    %99 = vector.broadcast %cst_51 : f32 to vector<4x16xf32>
    %100 = arith.subf %99, %98 : vector<4x16xf32>
    %cst_52 = arith.constant 0.000000e+00 : f32
    %101 = vector.broadcast %cst_52 : f32 to vector<4x16xf32>
    %102 = arith.maximumf %101, %100 : vector<4x16xf32>
    %c0_53 = arith.constant 0 : index
    %c0_54 = arith.constant 0 : index
    %103 = vector.load %arg14[%c0_53, %c0_54] : memref<16x16xf32, #tpu.memory_space<vmem>>, vector<4x16xf32>
    tpu.vector_store %arg14[%c0_53, %c0_54], %102 {strides = array<i32>} : memref<16x16xf32, #tpu.memory_space<vmem>>, vector<4x16xf32>,
    %104 = vector.extract_strided_slice %84 {offsets = [0, 1], sizes = [4, 1], strides = [1, 1]} : vector<8x4xf32> to vector<4x1xf32>
    %105 = vector.broadcast %104 : vector<4x1xf32> to vector<4x16xf32>
    %106 = vector.broadcast %86 : vector<1x16xf32> to vector<4x16xf32>
    %107 = arith.subf %105, %106 : vector<4x16xf32>
    %108 = math.absf %107 : vector<4x16xf32>
    %cst_55 = arith.constant 1.000000e+00 : f32
    %109 = vector.broadcast %cst_55 : f32 to vector<4x16xf32>
    %110 = arith.subf %109, %108 : vector<4x16xf32>
    %cst_56 = arith.constant 0.000000e+00 : f32
    %111 = vector.broadcast %cst_56 : f32 to vector<4x16xf32>
    %112 = arith.maximumf %111, %110 : vector<4x16xf32>
    %c4 = arith.constant 4 : index
    %c0_57 = arith.constant 0 : index
    %113 = vector.load %arg14[%c4, %c0_57] : memref<16x16xf32, #tpu.memory_space<vmem>>, vector<4x16xf32>
    tpu.vector_store %arg14[%c4, %c0_57], %112 {strides = array<i32>} : memref<16x16xf32, #tpu.memory_space<vmem>>, vector<4x16xf32>,
    %114 = vector.extract_strided_slice %84 {offsets = [0, 2], sizes = [4, 1], strides = [1, 1]} : vector<8x4xf32> to vector<4x1xf32>
    %115 = vector.broadcast %114 : vector<4x1xf32> to vector<4x16xf32>
    %116 = vector.broadcast %86 : vector<1x16xf32> to vector<4x16xf32>
    %117 = arith.subf %115, %116 : vector<4x16xf32>
    %118 = math.absf %117 : vector<4x16xf32>
    %cst_58 = arith.constant 1.000000e+00 : f32
    %119 = vector.broadcast %cst_58 : f32 to vector<4x16xf32>
    %120 = arith.subf %119, %118 : vector<4x16xf32>
    %cst_59 = arith.constant 0.000000e+00 : f32
    %121 = vector.broadcast %cst_59 : f32 to vector<4x16xf32>
    %122 = arith.maximumf %121, %120 : vector<4x16xf32>
    %c8 = arith.constant 8 : index
    %c0_60 = arith.constant 0 : index
    %123 = vector.load %arg14[%c8, %c0_60] : memref<16x16xf32, #tpu.memory_space<vmem>>, vector<4x16xf32>
    tpu.vector_store %arg14[%c8, %c0_60], %122 {strides = array<i32>} : memref<16x16xf32, #tpu.memory_space<vmem>>, vector<4x16xf32>,
    %124 = vector.extract_strided_slice %84 {offsets = [0, 3], sizes = [4, 1], strides = [1, 1]} : vector<8x4xf32> to vector<4x1xf32>
    %125 = vector.broadcast %124 : vector<4x1xf32> to vector<4x16xf32>
    %126 = vector.broadcast %86 : vector<1x16xf32> to vector<4x16xf32>
    %127 = arith.subf %125, %126 : vector<4x16xf32>
    %128 = math.absf %127 : vector<4x16xf32>
    %cst_61 = arith.constant 1.000000e+00 : f32
    %129 = vector.broadcast %cst_61 : f32 to vector<4x16xf32>
    %130 = arith.subf %129, %128 : vector<4x16xf32>
    %cst_62 = arith.constant 0.000000e+00 : f32
    %131 = vector.broadcast %cst_62 : f32 to vector<4x16xf32>
    %132 = arith.maximumf %131, %130 : vector<4x16xf32>
    %c12 = arith.constant 12 : index
    %c0_63 = arith.constant 0 : index
    %133 = vector.load %arg14[%c12, %c0_63] : memref<16x16xf32, #tpu.memory_space<vmem>>, vector<4x16xf32>
    tpu.vector_store %arg14[%c12, %c0_63], %132 {strides = array<i32>} : memref<16x16xf32, #tpu.memory_space<vmem>>, vector<4x16xf32>,
    %c0_64 = arith.constant 0 : index
    %c0_65 = arith.constant 0 : index
    %134 = vector.load %arg14[%c0_64, %c0_65] : memref<16x16xf32, #tpu.memory_space<vmem>>, vector<16x16xf32>
    %cst_66 = arith.constant dense<0.000000e+00> : vector<16x16xf32>
    %135 = tpu.matmul %134, %93, %cst_66 {dimension_numbers = #tpu.dot_dimension_numbers<[1], [0], [0], [1], [0, 0, 1, 1], [], []>} : vector<16x16xf32>, vector<16x16xf32>, vector<16x16xf32> -> vector<16x16xf32>
    %136 = arith.mulf %135, %87 : vector<16x16xf32>
    %137 = tpu.transpose %136, [1, 0] : vector<16x16xf32> -> vector<16x16xf32>
    %cst_67 = arith.constant dense<0.000000e+00> : vector<32x16xf32>
    %138 = tpu.matmul %88, %137, %cst_67 {dimension_numbers = #tpu.dot_dimension_numbers<[1], [0], [0], [1], [0, 0, 1, 1], [], []>} : vector<32x16xf32>, vector<16x16xf32>, vector<32x16xf32> -> vector<32x16xf32>
    %cst_68 = arith.constant dense<0.000000e+00> : vector<16x16xf32>
    %139 = tpu.matmul %92, %138, %cst_68 {dimension_numbers = #tpu.dot_dimension_numbers<[1], [0], [0], [1], [0, 0, 1, 1], [], []>} : vector<16x32xf32>, vector<32x16xf32>, vector<16x16xf32> -> vector<16x16xf32>
    %cst_69 = arith.constant dense<0xFF800000> : vector<16xf32>
    %140 = vector.multi_reduction <maximumf>, %139, %cst_69 [1] : vector<16x16xf32> to vector<16xf32>
    %141 = vector.shape_cast %140 : vector<16xf32> to vector<16x1xf32>
    %142 = vector.broadcast %141 : vector<16x1xf32> to vector<16x16xf32>
    %143 = arith.subf %139, %142 : vector<16x16xf32>
    %144 = math.exp %143 : vector<16x16xf32>
    %cst_70 = arith.constant dense<0.000000e+00> : vector<16x16xf32>
    %145 = tpu.matmul %144, %89, %cst_70 {dimension_numbers = #tpu.dot_dimension_numbers<[1], [0], [0], [1], [0, 0, 1, 1], [], []>} : vector<16x16xf32>, vector<16x16xf32>, vector<16x16xf32> -> vector<16x16xf32>
    %146 = tpu.reciprocal %145 {approx = true} : vector<16x16xf32> -> vector<16x16xf32>
    %147 = arith.mulf %144, %146 : vector<16x16xf32>
    %cst_71 = arith.constant dense<0.000000e+00> : vector<16x16xf32>
    %148 = tpu.matmul %147, %136, %cst_71 {dimension_numbers = #tpu.dot_dimension_numbers<[1], [0], [0], [1], [0, 0, 1, 1], [], []>} : vector<16x16xf32>, vector<16x16xf32>, vector<16x16xf32> -> vector<16x16xf32>
    %cst_72 = arith.constant dense<0.000000e+00> : vector<16x16xf32>
    %149 = tpu.matmul %148, %90, %cst_72 {dimension_numbers = #tpu.dot_dimension_numbers<[1], [0], [0], [1], [0, 0, 1, 1], [], []>} : vector<16x16xf32>, vector<16x16xf32>, vector<16x16xf32> -> vector<16x16xf32>
    %150 = vector.broadcast %91 : vector<1x16xf32> to vector<16x16xf32>
    %151 = arith.addf %149, %150 : vector<16x16xf32>
    %c0_73 = arith.constant 0 : index
    %c0_74 = arith.constant 0 : index
    %152 = vector.load %arg13[%c0_73, %c0_74] : memref<32x16xf32, #tpu.memory_space<vmem>>, vector<16x16xf32>
    tpu.vector_store %arg13[%c0_73, %c0_74], %151 {strides = array<i32>} : memref<32x16xf32, #tpu.memory_space<vmem>>, vector<16x16xf32>,
    %153 = vector.extract_strided_slice %2 {offsets = [16, 0], sizes = [16, 32], strides = [1, 1]} : vector<32x32xf32> to vector<16x32xf32>
    %c16 = arith.constant 16 : index
    %c0_75 = arith.constant 0 : index
    %154 = vector.load %arg1[%c16, %c0_75] : memref<32x16xf32, #tpu.memory_space<vmem>>, vector<16x16xf32>
    %155 = vector.extract_strided_slice %84 {offsets = [4, 0], sizes = [4, 1], strides = [1, 1]} : vector<8x4xf32> to vector<4x1xf32>
    %156 = vector.broadcast %155 : vector<4x1xf32> to vector<4x16xf32>
    %157 = vector.broadcast %86 : vector<1x16xf32> to vector<4x16xf32>
    %158 = arith.subf %156, %157 : vector<4x16xf32>
    %159 = math.absf %158 : vector<4x16xf32>
    %cst_76 = arith.constant 1.000000e+00 : f32
    %160 = vector.broadcast %cst_76 : f32 to vector<4x16xf32>
    %161 = arith.subf %160, %159 : vector<4x16xf32>
    %cst_77 = arith.constant 0.000000e+00 : f32
    %162 = vector.broadcast %cst_77 : f32 to vector<4x16xf32>
    %163 = arith.maximumf %162, %161 : vector<4x16xf32>
    %c0_78 = arith.constant 0 : index
    %c0_79 = arith.constant 0 : index
    %164 = vector.load %arg14[%c0_78, %c0_79] : memref<16x16xf32, #tpu.memory_space<vmem>>, vector<4x16xf32>
    tpu.vector_store %arg14[%c0_78, %c0_79], %163 {strides = array<i32>} : memref<16x16xf32, #tpu.memory_space<vmem>>, vector<4x16xf32>,
    %165 = vector.extract_strided_slice %84 {offsets = [4, 1], sizes = [4, 1], strides = [1, 1]} : vector<8x4xf32> to vector<4x1xf32>
    %166 = vector.broadcast %165 : vector<4x1xf32> to vector<4x16xf32>
    %167 = vector.broadcast %86 : vector<1x16xf32> to vector<4x16xf32>
    %168 = arith.subf %166, %167 : vector<4x16xf32>
    %169 = math.absf %168 : vector<4x16xf32>
    %cst_80 = arith.constant 1.000000e+00 : f32
    %170 = vector.broadcast %cst_80 : f32 to vector<4x16xf32>
    %171 = arith.subf %170, %169 : vector<4x16xf32>
    %cst_81 = arith.constant 0.000000e+00 : f32
    %172 = vector.broadcast %cst_81 : f32 to vector<4x16xf32>
    %173 = arith.maximumf %172, %171 : vector<4x16xf32>
    %c4_82 = arith.constant 4 : index
    %c0_83 = arith.constant 0 : index
    %174 = vector.load %arg14[%c4_82, %c0_83] : memref<16x16xf32, #tpu.memory_space<vmem>>, vector<4x16xf32>
    tpu.vector_store %arg14[%c4_82, %c0_83], %173 {strides = array<i32>} : memref<16x16xf32, #tpu.memory_space<vmem>>, vector<4x16xf32>,
    %175 = vector.extract_strided_slice %84 {offsets = [4, 2], sizes = [4, 1], strides = [1, 1]} : vector<8x4xf32> to vector<4x1xf32>
    %176 = vector.broadcast %175 : vector<4x1xf32> to vector<4x16xf32>
    %177 = vector.broadcast %86 : vector<1x16xf32> to vector<4x16xf32>
    %178 = arith.subf %176, %177 : vector<4x16xf32>
    %179 = math.absf %178 : vector<4x16xf32>
    %cst_84 = arith.constant 1.000000e+00 : f32
    %180 = vector.broadcast %cst_84 : f32 to vector<4x16xf32>
    %181 = arith.subf %180, %179 : vector<4x16xf32>
    %cst_85 = arith.constant 0.000000e+00 : f32
    %182 = vector.broadcast %cst_85 : f32 to vector<4x16xf32>
    %183 = arith.maximumf %182, %181 : vector<4x16xf32>
    %c8_86 = arith.constant 8 : index
    %c0_87 = arith.constant 0 : index
    %184 = vector.load %arg14[%c8_86, %c0_87] : memref<16x16xf32, #tpu.memory_space<vmem>>, vector<4x16xf32>
    tpu.vector_store %arg14[%c8_86, %c0_87], %183 {strides = array<i32>} : memref<16x16xf32, #tpu.memory_space<vmem>>, vector<4x16xf32>,
    %185 = vector.extract_strided_slice %84 {offsets = [4, 3], sizes = [4, 1], strides = [1, 1]} : vector<8x4xf32> to vector<4x1xf32>
    %186 = vector.broadcast %185 : vector<4x1xf32> to vector<4x16xf32>
    %187 = vector.broadcast %86 : vector<1x16xf32> to vector<4x16xf32>
    %188 = arith.subf %186, %187 : vector<4x16xf32>
    %189 = math.absf %188 : vector<4x16xf32>
    %cst_88 = arith.constant 1.000000e+00 : f32
    %190 = vector.broadcast %cst_88 : f32 to vector<4x16xf32>
    %191 = arith.subf %190, %189 : vector<4x16xf32>
    %cst_89 = arith.constant 0.000000e+00 : f32
    %192 = vector.broadcast %cst_89 : f32 to vector<4x16xf32>
    %193 = arith.maximumf %192, %191 : vector<4x16xf32>
    %c12_90 = arith.constant 12 : index
    %c0_91 = arith.constant 0 : index
    %194 = vector.load %arg14[%c12_90, %c0_91] : memref<16x16xf32, #tpu.memory_space<vmem>>, vector<4x16xf32>
    tpu.vector_store %arg14[%c12_90, %c0_91], %193 {strides = array<i32>} : memref<16x16xf32, #tpu.memory_space<vmem>>, vector<4x16xf32>,
    %c0_92 = arith.constant 0 : index
    %c0_93 = arith.constant 0 : index
    %195 = vector.load %arg14[%c0_92, %c0_93] : memref<16x16xf32, #tpu.memory_space<vmem>>, vector<16x16xf32>
    %cst_94 = arith.constant dense<0.000000e+00> : vector<16x16xf32>
    %196 = tpu.matmul %195, %154, %cst_94 {dimension_numbers = #tpu.dot_dimension_numbers<[1], [0], [0], [1], [0, 0, 1, 1], [], []>} : vector<16x16xf32>, vector<16x16xf32>, vector<16x16xf32> -> vector<16x16xf32>
    %197 = arith.mulf %196, %87 : vector<16x16xf32>
    %198 = tpu.transpose %197, [1, 0] : vector<16x16xf32> -> vector<16x16xf32>
    %cst_95 = arith.constant dense<0.000000e+00> : vector<32x16xf32>
    %199 = tpu.matmul %88, %198, %cst_95 {dimension_numbers = #tpu.dot_dimension_numbers<[1], [0], [0], [1], [0, 0, 1, 1], [], []>} : vector<32x16xf32>, vector<16x16xf32>, vector<32x16xf32> -> vector<32x16xf32>
    %cst_96 = arith.constant dense<0.000000e+00> : vector<16x16xf32>
    %200 = tpu.matmul %153, %199, %cst_96 {dimension_numbers = #tpu.dot_dimension_numbers<[1], [0], [0], [1], [0, 0, 1, 1], [], []>} : vector<16x32xf32>, vector<32x16xf32>, vector<16x16xf32> -> vector<16x16xf32>
    %cst_97 = arith.constant dense<0xFF800000> : vector<16xf32>
    %201 = vector.multi_reduction <maximumf>, %200, %cst_97 [1] : vector<16x16xf32> to vector<16xf32>
    %202 = vector.shape_cast %201 : vector<16xf32> to vector<16x1xf32>
    %203 = vector.broadcast %202 : vector<16x1xf32> to vector<16x16xf32>
    %204 = arith.subf %200, %203 : vector<16x16xf32>
    %205 = math.exp %204 : vector<16x16xf32>
    %cst_98 = arith.constant dense<0.000000e+00> : vector<16x16xf32>
    %206 = tpu.matmul %205, %89, %cst_98 {dimension_numbers = #tpu.dot_dimension_numbers<[1], [0], [0], [1], [0, 0, 1, 1], [], []>} : vector<16x16xf32>, vector<16x16xf32>, vector<16x16xf32> -> vector<16x16xf32>
    %207 = tpu.reciprocal %206 {approx = true} : vector<16x16xf32> -> vector<16x16xf32>
    %208 = arith.mulf %205, %207 : vector<16x16xf32>
    %cst_99 = arith.constant dense<0.000000e+00> : vector<16x16xf32>
    %209 = tpu.matmul %208, %197, %cst_99 {dimension_numbers = #tpu.dot_dimension_numbers<[1], [0], [0], [1], [0, 0, 1, 1], [], []>} : vector<16x16xf32>, vector<16x16xf32>, vector<16x16xf32> -> vector<16x16xf32>
    %cst_100 = arith.constant dense<0.000000e+00> : vector<16x16xf32>
    %210 = tpu.matmul %209, %90, %cst_100 {dimension_numbers = #tpu.dot_dimension_numbers<[1], [0], [0], [1], [0, 0, 1, 1], [], []>} : vector<16x16xf32>, vector<16x16xf32>, vector<16x16xf32> -> vector<16x16xf32>
    %211 = vector.broadcast %91 : vector<1x16xf32> to vector<16x16xf32>
    %212 = arith.addf %210, %211 : vector<16x16xf32>
    %c16_101 = arith.constant 16 : index
    %c0_102 = arith.constant 0 : index
    %213 = vector.load %arg13[%c16_101, %c0_102] : memref<32x16xf32, #tpu.memory_space<vmem>>, vector<16x16xf32>
    tpu.vector_store %arg13[%c16_101, %c0_102], %212 {strides = array<i32>} : memref<32x16xf32, #tpu.memory_space<vmem>>, vector<16x16xf32>,
    return
  }
}

</mosaic_0001>

<bundles_post_ra>
// kernel: deformable_attention_1d.1
= control target key start
LH: loop header
LB: loop body
LE: loop exit
PB: predicated region body
PF: predicated region fallthrough
CT: control target
= control target key end

     0   :  { %vm53_vm0 = vcmask 261120   ;;  %s2285_s0 = inlined_call_operand.vmem [shape: f32[32,32], index: 0, kind: input, shape index: {}]   ;;  %s2286_s1 = inlined_call_operand.vmem [shape: f32[32,16], index: 1, kind: input, shape index: {}]   ;;  %s2287_s2 = inlined_call_operand.vmem [shape: f32[32,32], index: 2, kind: input, shape index: {}]   ;;  %s2288_s3 = inlined_call_operand.vmem [shape: f32[48,32], index: 3, kind: input, shape index: {}]   ;;  %s2289_s4 = inlined_call_operand.vmem [shape: f32[48,32], index: 4, kind: input, shape index: {}]   ;;  %s2290_s5 = inlined_call_operand.vmem [shape: f32[1,32], index: 5, kind: input, shape index: {}]   ;;  %s2291_s6 = inlined_call_operand.vmem [shape: f32[32,4], index: 6, kind: input, shape index: {}]   ;;  %s2292_s7 = inlined_call_operand.vmem [shape: f32[8,1], index: 7, kind: input, shape index: {}]   ;;  %s2293_s8 = inlined_call_operand.vmem [shape: f32[32,16], index: 8, kind: input, shape index: {}]   ;;  %s2294_s9 = inlined_call_operand.vmem [shape: f32[16,16], index: 9, kind: input, shape index: {}]   ;;  %s2295_s10 = inlined_call_operand.vmem [shape: f32[16,16], index: 10, kind: input, shape index: {}]   ;;  %s2296_s11 = inlined_call_operand.vmem [shape: f32[16,16], index: 11, kind: input, shape index: {}]   ;;  %s2297_s12 = inlined_call_operand.vmem [shape: f32[1,16], index: 12, kind: input, shape index: {}]   ;;  %s2298_s13 = inlined_call_operand.hbm [shape: f32[32,16], index: 13, kind: output, shape index: {}]  }
   0x1   :  { %v49_v0 = vld [vmem:[%s2287_s2] sm:$0xff]  ;;  %v50_v1 = vld [vmem:[%s2287_s2 + $0x8] sm:$0xff]  ;;  %v51_v2 = vld [vmem:[%s2287_s2 + $0x10] sm:$0xff] }
   0x2   :  { %v1815_v3 = vpack.c.bf16 %v50_v1, %v49_v0  ;;  %v52_v4 = vld [vmem:[%s2287_s2 + $0x18] sm:$0xff]  ;;  %v45_v5 = vld [vmem:[%s2285_s0] sm:$0xff] }
   0x3   :  { %v1819_v6 = vpack.c.bf16 %v52_v4, %v51_v2  ;;  %1683 = vmatprep.mubr.msk.f32.mxu0 %vm53_vm0, %v45_v5 }
   0x4   :  { %18 = vsyncpa [#allocation4], 0  ;;  %1816 = vmatprep.subr.bf16.mxu0 %v1815_v3  ;;  %v46_v7 = vld [vmem:[%s2285_s0 + $0x8] sm:$0xff]  ;;  %v47_v8 = vld [vmem:[%s2285_s0 + $0x10] sm:$0xff]  ;;  %v1957_v25 = vmov 0.0|0.0   ;;  %vm1958_vm1 = vmmov 0  }
   0x5   :  { %1818 = vmatpush3.bf16.msra.mxu0 %v1815_v3  ;;  %v48_v9 = vld [vmem:[%s2285_s0 + $0x18] sm:$0xff]  ;;  %v151_v10 = vld [vmem:[%s2288_s3] sm:$0xff]  ;;  %v152_v17 = vld [vmem:[%s2288_s3 + $0x8] sm:$0xff]  ;;  %v1959_v29 = vmov 0.0   ;;  %v1960_v31 = vmov 0   ;;  %vm442_vm3 = vcmask 125952  }
   0x6   :  { %1820 = vmatprep.subr.bf16.mxu0 %v1819_v6  ;;  %1697 = vmatprep.mubr.msk.f32.mxu1 %vm53_vm0, %v151_v10  ;;  %v153_v18 = vld [vmem:[%s2288_s3 + $0x10] sm:$0xff]  ;;  %v154_v19 = vld [vmem:[%s2288_s3 + $0x18] sm:$0xff]  ;;  %v155_v20 = vld [vmem:[%s2288_s3 + $0x20] sm:$0xff]  ;;  %vm473_vm4 = vcmask 130048   ;;  %vm1010_vm5 = vcmask 130052  }
   0x7   :  { %v156_v21 = vld [vmem:[%s2288_s3 + $0x28] sm:$0xff]  ;;  %v323_v22 = vld [vmem:[%s2291_s6] sm:$0xff]  ;;  %v325_v26 = vld [vmem:[%s2291_s6 + $0x10] sm:$0xff]  ;;  %1907 = vset.pattern.permute.xlu0 %v1960_v31 }
   0x8   :  { %v324_v23 = vld [vmem:[%s2291_s6 + $0x8] sm:$0xff]  ;;  %v326_v27 = vld [vmem:[%s2291_s6 + $0x18] sm:$0xff]  ;;  %v402_v30 = vld [vmem:[%s2292_s7] sm:$0xff] }
   0x9   :  { %1822 = vmatpush3.bf16.msra.mxu0 %v1819_v6  ;;  %v1832_v24 = vpack.c.bf16 %v324_v23, %v323_v22  ;;  %v1835_v28 = vpack.c.bf16 %v326_v27, %v325_v26  ;;  %405 = vperm.xlu0 %1907, %v402_v30   ;;  %v271_v32 = vld [vmem:[%s2289_s4 + $0x8] sm:$0xff]  ;;  %v270_v33 = vld [vmem:[%s2289_s4] sm:$0xff]  ;;  %v272_v38 = vld [vmem:[%s2289_s4 + $0x10] sm:$0xff]  ;;  %v1961_v22 = vmov 1  }
   0xa   :  { %1831 = vmatprep.subr.bf16.mxu0 %v1957_v25  ;;  %v273_v41 = vld [vmem:[%s2289_s4 + $0x18] sm:$0xff]  ;;  %v274_v44 = vld [vmem:[%s2289_s4 + $0x20] sm:$0xff]  ;;  %v275_v48 = vld [vmem:[%s2289_s4 + $0x28] sm:$0xff]  ;;  %1908 = vset.pattern.permute.xlu1 %v1961_v22 }
   0xb   :  { %v1559_v54 = vld [vmem:[%s2290_s5] ss:$0 sm:$0xff]  ;;  %vm2169_vm6 = vmpackc.low %vm473_vm4, %vm473_vm4 }
   0xc   :  { %1684 = vmatmul.mubr.msk.f32.vlgmr.msra.gmra.mrb[0].mxu0 %vm53_vm0, %v46_v7 }
   0xd   :  { %1686 = vmatprep.mubr.msk.f32.mxu0 %vm53_vm0, %v47_v8  ;;  %1833 = vmatpush3.bf16.msra.mxu0 %v1832_v24 }
   0xe   :  { %1834 = vmatprep.subr.bf16.mxu0 %v1957_v25 }
  0x10   :  { %1687 = vmatmul.mubr.msk.f32.gmra.mrb[2].mxu0 %vm53_vm0, %v48_v9 }
  0x11   :  { %1836 = vmatpush3.bf16.msra.mxu0 %v1835_v28  ;;  %1714 = vmatprep.mubr.msk.f32.mxu0 %vm1958_vm1, %v1959_v29 }
  0x88   :  { %v406_v26 = vpop.permute.xlu0 %405 }
  0xdf   :  { %v2069_v11 = vpop.f32.mrb[0].mxu0 }
  0xe0   :  { %v2071_v12 = vpop.f32.mrb[1].mxu0 }
  0xe1   :  { %v1823_v13 = vpack.c.bf16 %v2069_v11, %v2071_v12 }
  0xe3   :  { %v2075_v14 = vpop.f32.mrb[2].mxu0  ;;  %1824 = vmatprep.subr.bf16.mxu1 %v1823_v13 }
  0xe4   :  { %v2077_v15 = vpop.f32.mrb[3].mxu0  ;;  %1826 = vmatpush3.bf16.msra.mxu1 %v1823_v13 }
  0xe5   :  { %v1827_v16 = vpack.c.bf16 %v2075_v14, %v2077_v15 }
  0xe7   :  { %1828 = vmatprep.subr.bf16.mxu1 %v1827_v16 }
  0xe8   :  { %1830 = vmatpush3.bf16.msra.mxu1 %v1827_v16 }
  0xeb   :  { %1698 = vmatmul.mubr.msk.f32.vlgmr.msra.gmra.mrb[0].mxu1 %vm53_vm0, %v152_v17 }
  0xec   :  { %1700 = vmatprep.mubr.msk.f32.mxu1 %vm53_vm0, %v153_v18 }
  0xef   :  { %1701 = vmatmul.mubr.msk.f32.gmra.mrb[2].mxu1 %vm53_vm0, %v154_v19 }
  0xf0   :  { %1703 = vmatprep.mubr.msk.f32.mxu1 %vm53_vm0, %v155_v20 }
  0xf3   :  { %1704 = vmatmul.mubr.msk.f32.gmra.mrb[4].mxu1 %vm53_vm0, %v156_v21 }
 0x1be   :  { %v1699_v34 = vpop.f32.mrb[0].mxu1 }
 0x1bf   :  { %v277_v35 = vmul.f32 %v1699_v34, %v271_v32  ;;  %v241_v36 = vpop.f32.mrb[1].mxu1 }
 0x1c0   :  { %v276_v37 = vmul.f32 %v270_v33, %v241_v36  ;;  %v1962_v36 = vmov 2  }
 0x1c2   :  { %v283_v39 = vadd.f32 %v277_v35, %v276_v37  ;;  %v1702_v40 = vpop.f32.mrb[2].mxu1  ;;  %v1963_v37 = vmov 3  }
 0x1c3   :  { %v251_v42 = vpop.f32.mrb[3].mxu1  ;;  %v279_v45 = vmul.f32 %v1702_v40, %v273_v41  ;;  %v417_v41 = vlaneseq }
 0x1c4   :  { %v278_v43 = vmul.f32 %v272_v38, %v251_v42  ;;  %v431_v38 = vld [vmem:[%s2286_s1] sm:$0xff] }
 0x1c5   :  { %v418_v42 = vand.u32 127, %v417_v41  ;;  %v429_v41 = vld [vmem:[%s2296_s11 + $0x8] sm:$0xff] }
 0x1c6   :  { %v284_v46 = vadd.f32 %v283_v39, %v278_v43  ;;  %v1705_v47 = vpop.f32.mrb[4].mxu1  ;;  %v432_v39 = vld [vmem:[%s2286_s1 + $0x8] sm:$0xff] }
 0x1c7   :  { %v261_v49 = vpop.f32.mrb[5].mxu1  ;;  %v281_v52 = vmul.f32 %v1705_v47, %v275_v48  ;;  %v1837_v40 = vpack.c.bf16 %v432_v39, %v431_v38  ;;  %v419_v43 = vcvt.s32.f32 %v418_v42  ;;  %v1009_v38 = vld [vmem:[%s2286_s1 + $0x18] sm:$0xff] }
 0x1c8   :  { %v280_v50 = vmul.f32 %v274_v44, %v261_v49  ;;  %v285_v51 = vadd.f32 %v284_v46, %v279_v45 }
 0x1c9   :  { %1838 = vmatprep.subr.bf16.mxu0 %v1837_v40 }
 0x1ca   :  { %v286_v53 = vadd.f32 %v285_v51, %v280_v50 }
 0x1cc   :  { %v287_v55 = vadd.f32 %v286_v53, %v281_v52 }
 0x1ce   :  { %v295_v56 = vadd.f32 %v1559_v54, %v287_v55 }
 0x1d0   :  { %v297_v57 = vmul.f32 0.70710677, %v295_v56  ;;  %v296_v19 = vmul.f32 0.5, %v295_v56 }
 0x1d2   :  { %v298_v58 = vand.u32 2147483647, %v297_v57  ;;  %vm318_vm2 = vcmp.lt.f32.partialorder %v297_v57, 0.0 }
 0x1d4   :  { %v299_v59 = vmul.f32 0.3275911, %v298_v58  ;;  %v312_v61 = vsub.f32 0.0, %v298_v58 }
 0x1d6   :  { %v300_v60 = vadd.f32 1.0, %v299_v59  ;;  %v313_v63 = vmul.f32 %v312_v61, %v298_v58 }
 0x1d8   :  { %1911 = vrcp.f32 %v300_v60  ;;  %v314_v2 = vmul.f32 1.442695, %v313_v63 }
 0x1da   :  { %1913 = vpow2.f32 %v314_v2  ;;  %v2151_v2 = vld [vmem:[%s2293_s8] sm:$0xff] }
 0x1db   :  { %1728 = vmatprep.mubr.msk.f32.mxu1 %vm473_vm4, %v2151_v2 }
 0x1e2   :  { %v1912_v62 = vpop.eup %1911 }
 0x1e3   :  { %v303_v0 = vmul.f32 1.0614054, %v1912_v62 }
 0x1e4   :  { %v1914_v10 = vpop.eup %1913 }
 0x1e5   :  { %v304_v1 = vadd.f32 -1.4531521, %v303_v0 }
 0x1e7   :  { %v305_v3 = vmul.f32 %v1912_v62, %v304_v1 }
 0x1e9   :  { %v306_v4 = vadd.f32 1.4214138, %v305_v3  ;;  %v2158_v3 = vld [vmem:[%s2294_s9 + $0x8] sm:$0xff] }
 0x1eb   :  { %v307_v5 = vmul.f32 %v1912_v62, %v306_v4  ;;  %v2163_v4 = vld [vmem:[%s2294_s9] sm:$0xff] }
 0x1ed   :  { %v308_v6 = vadd.f32 -0.28449672, %v307_v5 }
 0x1ef   :  { %v309_v7 = vmul.f32 %v1912_v62, %v308_v6 }
 0x1f1   :  { %v310_v8 = vadd.f32 0.2548296, %v309_v7 }
 0x1f3   :  { %v311_v9 = vmul.f32 %v1912_v62, %v310_v8 }
 0x1f5   :  { %v316_v13 = vmul.f32 %v1914_v10, %v311_v9  ;;  %v2180_v10 = vld [vmem:[%s2293_s8 + $0x8] sm:$0xff] }
 0x1f7   :  { %v317_v16 = vsub.f32 1.0, %v316_v13  ;;  %v2185_v13 = vld [vmem:[%s2293_s8 + $0x10] sm:$0xff] }
 0x1f9   :  { %v319_v17 = vsub.f32 0.0, %v317_v16 }
 0x1fb   :  { %v320_v18 = vsel %vm318_vm2, %v319_v17, %v317_v16  ;;  %v2194_v16 = vld [vmem:[%s2293_s8 + $0x18] sm:$0xff] }
 0x1fc   :  { %v321_v20 = vadd.f32 1.0, %v320_v18 }
 0x1fe   :  { %v322_v21 = vmul.f32 %v321_v20, %v296_v19 }
 0x200   :  { %1715 = vmatmul.mubr.msk.f32.vlgmr.msra.gmra.mrb[4].mxu0 %vm53_vm0, %v322_v21 }
 0x201   :  { %1840 = vmatpush3.bf16.msra.mxu0 %v1837_v40  ;;  %v428_v40 = vld [vmem:[%s2296_s11] sm:$0xff] }
 0x202   :  { %v2226_v42 = vpack.c.bf16 %v429_v41, %v428_v40 }
 0x2d3   :  { %v396_v23 = vpop.f32.mrb[4].mxu0 }
 0x2d4   :  { %1915 = vtanh.f32 %v396_v23  ;;  %v1716_v24 = vpop.f32.mrb[5].mxu0 }
 0x2de   :  { %v1916_v25 = vpop.eup %1915 }
 0x2df   :  { %v401_v27 = vmul.f32 4.0, %v1916_v25 }
 0x2e1   :  { %v408_v28 = vadd.f32 %v406_v26, %v401_v27  ;;  %v426_v27 = vld [vmem:[%s2295_s10] sm:$0xff] }
 0x2e3   :  { %v409_v29 = vmul.f32 2.0, %v408_v28  ;;  %v427_v28 = vld [vmem:[%s2295_s10 + $0x8] sm:$0xff] }
 0x2e5   :  { %v411_v30 = vmul.f32 0.33333334, %v409_v29  ;;  %v2208_v29 = vpack.c.bf16 %v427_v28, %v426_v27 }
 0x2e7   :  { %v1561_v31 = vadd.f32 -1.0, %v411_v30 }
 0x2e9   :  { %v413_v32 = vadd.f32 1.0, %v1561_v31 }
 0x2eb   :  { %v414_v33 = vmul.f32 16.0, %v413_v32 }
 0x2ed   :  { %v1562_v34 = vadd.f32 -1.0, %v414_v33 }
 0x2ef   :  { %v416_v35 = vmul.f32 0.5, %v1562_v34 }
 0x2f1   :  { %445 = vperm.xlu1 %1908, %v416_v35   ;;  %435 = vperm.xlu0 %1907, %v416_v35  }
 0x2f5   :  { %1909 = vset.pattern.permute.xlu1 %v1962_v36  ;;  %1910 = vset.pattern.permute.xlu0 %v1963_v37  ;;  %v1008_v37 = vld [vmem:[%s2286_s1 + $0x10] sm:$0xff] }
 0x2f6   :  { %454 = vperm.xlu1 %1909, %v416_v35   ;;  %463 = vperm.xlu0 %1910, %v416_v35   ;;  %v1867_v39 = vpack.c.bf16 %v1009_v38, %v1008_v37 }
 0x370   :  { %v446_v44 = vpop.permute.xlu1 %445  ;;  %v436_v45 = vpop.permute.xlu0 %435 }
 0x371   :  { %v448_v46 = vsub.f32 %v446_v44, %v419_v43  ;;  %v438_v47 = vsub.f32 %v436_v45, %v419_v43 }
 0x373   :  { %v449_v48 = vand.u32 2147483647, %v448_v46  ;;  %v439_v49 = vand.u32 2147483647, %v438_v47 }
 0x375   :  { %v450_v50 = vsub.f32 1.0, %v449_v48  ;;  %v440_v51 = vsub.f32 1.0, %v439_v49  ;;  %v455_v52 = vpop.permute.xlu1 %454  ;;  %v464_v53 = vpop.permute.xlu0 %463 }
 0x376   :  { %v457_v54 = vsub.f32 %v455_v52, %v419_v43  ;;  %v466_v55 = vsub.f32 %v464_v53, %v419_v43 }
 0x377   :  { %v451_v56 = vmax.f32 %v450_v50, 0.0  ;;  %v441_v57 = vmax.f32 %v440_v51, 0.0 }
 0x378   :  { %v458_v58 = vand.u32 2147483647, %v457_v54  ;;  %v467_v59 = vand.u32 2147483647, %v466_v55 }
 0x379   :  { %452 = vst.msk [vmem:[#allocation2 + $0x4] sm:$0xf] %vm442_vm3, %v451_v56  ;;  %443 = vst.msk [vmem:[#allocation2] sm:$0xf] %vm442_vm3, %v441_v57 }
 0x37a   :  { %v459_v60 = vsub.f32 1.0, %v458_v58  ;;  %v468_v61 = vsub.f32 1.0, %v467_v59 }
 0x37c   :  { %v460_v62 = vmax.f32 %v459_v60, 0.0  ;;  %v469_v63 = vmax.f32 %v468_v61, 0.0 }
 0x37e   :  { %461 = vst.msk [vmem:[#allocation2 + $0x8] sm:$0xf] %vm442_vm3, %v460_v62  ;;  %470 = vst.msk [vmem:[#allocation2 + $0xc] sm:$0xf] %vm442_vm3, %v469_v63 }
 0x380   :  { %v471_v0 = vld [vmem:[#allocation2] sm:$0xff] }
 0x381   :  { %1721 = vmatprep.mubr.msk.f32.mxu0 %vm473_vm4, %v471_v0  ;;  %1011 = vst.msk [vmem:[#allocation2 - $0x4] sm:$0xf0] %vm1010_vm5, %v441_v57  ;;  %1012 = vst.msk [vmem:[#allocation2] sm:$0xf0] %vm1010_vm5, %v451_v56 }
 0x385   :  { %v472_v1 = vld [vmem:[#allocation2 + $0x8] sm:$0xff] }
 0x386   :  { %1722 = vmatmul.mubr.msk.f32.vlgmr.msra.gmra.mrb[6].mxu0 %vm473_vm4, %v472_v1  ;;  %1013 = vst.msk [vmem:[#allocation2 + $0x4] sm:$0xf0] %vm1010_vm5, %v460_v62  ;;  %1014 = vst.msk [vmem:[#allocation2 + $0x8] sm:$0xf0] %vm1010_vm5, %v469_v63 }
 0x387   :  { %1742 = vmatprep.mubr.msk.f32.mxu0 %vm53_vm0, %v2071_v12 }
 0x388   :  { %v1015_v49 = vld [vmem:[#allocation2] sm:$0xff] }
 0x38d   :  { %v1016_v50 = vld [vmem:[#allocation2 + $0x8] sm:$0xff] }
 0x459   :  { %v1723_v5 = vpop.f32.mrb[6].mxu0 }
 0x45a   :  { %v556_v12 = vmul.f32 %v1723_v5, %v2158_v3  ;;  %v546_v6 = vpop.f32.mrb[7].mxu0 }
 0x45b   :  { %v555_v7 = vmul.f32 %v546_v6, %v2163_v4 }
 0x45d   :  { %v1841_v9 = vpack.c.bf16 %v556_v12, %v555_v7 }
 0x45f   :  { %1843 = vmatprep.subr.msk.bf16.mxu1 %vm2169_vm6, %v1841_v9 }
 0x460   :  { %1846 = vmatpush3.bf16.xpose.msk.msra.mxu1 %vm2169_vm6, %v1841_v9 }
 0x461   :  { %1856 = vmatprep.subr.bf16.mxu1 %v2208_v29 }
 0x467   :  { %1729 = vmatmul.mubr.msk.f32.vlgmr.msra.gmra.mrb[6].mxu1 %vm473_vm4, %v2180_v10 }
 0x468   :  { %1731 = vmatprep.mubr.msk.f32.mxu1 %vm473_vm4, %v2185_v13  ;;  %1858 = vmatpush3.bf16.msra.mxu1 %v2208_v29 }
 0x469   :  { %1864 = vmatprep.subr.bf16.mxu1 %v2226_v42 }
 0x46b   :  { %1732 = vmatmul.mubr.msk.f32.gmra.mrb[8].mxu1 %vm473_vm4, %v2194_v16 }
 0x53a   :  { %v1730_v17 = vpop.f32.mrb[6].mxu1 }
 0x53b   :  { %v641_v18 = vpop.f32.mrb[7].mxu1 }
 0x53c   :  { %v1847_v19 = vpack.c.bf16 %v1730_v17, %v641_v18 }
 0x53e   :  { %v1733_v20 = vpop.f32.mrb[8].mxu1  ;;  %1848 = vmatprep.subr.bf16.mxu0 %v1847_v19 }
 0x53f   :  { %v651_v21 = vpop.f32.mrb[9].mxu1  ;;  %1850 = vmatpush3.bf16.msra.mxu0 %v1847_v19 }
 0x540   :  { %v1851_v22 = vpack.c.bf16 %v1733_v20, %v651_v21 }
 0x542   :  { %1852 = vmatprep.subr.bf16.mxu0 %v1851_v22 }
 0x543   :  { %1854 = vmatpush3.bf16.msra.mxu0 %v1851_v22 }
 0x544   :  { %1860 = vmatprep.subr.bf16.mxu0 %v1841_v9 }
 0x546   :  { %1743 = vmatmul.mubr.msk.f32.vlgmr.msra.gmra.mrb[8].mxu0 %vm53_vm0, %v2069_v11 }
 0x547   :  { %1862 = vmatpush3.bf16.msra.mxu0 %v1841_v9 }
 0x548   :  { %1868 = vmatprep.subr.bf16.mxu0 %v1867_v39 }
 0x619   :  { %v1744_v23 = vpop.f32.mrb[8].mxu0 }
 0x61a   :  { %v732_v24 = vpop.f32.mrb[9].mxu0  ;;  %v744_v25 = vsel %vm473_vm4, %v1744_v23, -inf }
 0x61b   :  { %745 = vmax.xlane.f32.xlu0 %v744_v25  ;;  %v741_v26 = vsel %vm473_vm4, %v732_v24, -inf }
 0x61c   :  { %742 = vmax.xlane.f32.xlu1 %v741_v26 }
 0x6a8   :  { %v746_v11 = vpop.xlane.xlu0 %745 }
 0x6a9   :  { %v748_v30 = vsub.f32 %v1744_v23, %v746_v11  ;;  %v743_v31 = vpop.xlane.xlu1 %742 }
 0x6aa   :  { %v747_v32 = vsub.f32 %v732_v24, %v743_v31 }
 0x6ab   :  { %v751_v33 = vmul.f32 1.442695, %v748_v30 }
 0x6ac   :  { %v749_v34 = vmul.f32 1.442695, %v747_v32 }
 0x6ae   :  { %1917 = vpow2.f32 %v749_v34 }
 0x6af   :  { %1919 = vpow2.f32 %v751_v33 }
 0x6b8   :  { %v1918_v35 = vpop.eup %1917 }
 0x6b9   :  { %v1920_v36 = vpop.eup %1919  ;;  %1749 = vmatprep.mubr.msk.f32.mxu1 %vm473_vm4, %v1918_v35 }
 0x6ba   :  { %1750 = vmatmul.mubr.msk.f32.vlgmr.msra.gmra.mrb[10].mxu1 %vm473_vm4, %v1920_v36 }
 0x6bb   :  { %1866 = vmatpush3.bf16.msra.mxu1 %v2226_v42 }
 0x78d   :  { %v1751_v43 = vpop.f32.mrb[10].mxu1 }
 0x78e   :  { %1921 = vrcp.f32 %v1751_v43  ;;  %v825_v44 = vpop.f32.mrb[11].mxu1 }
 0x78f   :  { %1923 = vrcp.f32 %v825_v44 }
 0x798   :  { %v1922_v45 = vpop.eup %1921 }
 0x799   :  { %v1924_v46 = vpop.eup %1923  ;;  %v837_v48 = vmul.f32 %v1922_v45, %v1920_v36 }
 0x79a   :  { %v836_v47 = vmul.f32 %v1924_v46, %v1918_v35 }
 0x79c   :  { %1756 = vmatprep.mubr.msk.f32.mxu0 %vm473_vm4, %v836_v47 }
 0x79d   :  { %1757 = vmatmul.mubr.msk.f32.vlgmr.msra.gmra.mrb[10].mxu0 %vm473_vm4, %v837_v48 }
 0x79e   :  { %1870 = vmatpush3.bf16.msra.mxu0 %v1867_v39  ;;  %1770 = vmatprep.mubr.msk.f32.mxu0 %vm473_vm4, %v1015_v49 }
 0x7a1   :  { %1771 = vmatmul.mubr.msk.f32.vlgmr.msra.gmra.mrb[12].mxu0 %vm473_vm4, %v1016_v50 }
 0x7a2   :  { %1791 = vmatprep.mubr.msk.f32.mxu0 %vm53_vm0, %v2077_v15  ;;  %v1577_v15 = vld [vmem:[%s2297_s12] ss:$0 sm:$0xff]  ;;  %s1964_s12 = smov [#allocation3]  }
 0x7a3   :  { %s1538_s5 = sshll.u32 %s1964_s12, 4  ;;  %s1539_s5 = int_to_ptr.vmem [resolvable:$true] %s1538_s5 }
 0x7a4   :  { %s1933_s19 = scalar_lea.vmem %s1539_s5, 512  ;;  %p1938_p1 = scmp.lt.s32.totalorder %s1539_s5, %s1539_s5 }
 0x7a5   :  { %p1934_p0 = scmp.ne.s32.totalorder %s1539_s5, %s1933_s19  ;;  %p1939_p2 = scmp.lt.s32.totalorder %s1933_s19, %s1933_s19 }
 0x7a7   :  { %p1940_p3 = por %p1939_p2, %p1938_p1 }
 0x7a9   :  { %p1941_p4 = pnand %p1940_p3, %p1934_p0 }
 0x870   :  { %v1758_v51 = vpop.f32.mrb[10].mxu0 }
 0x871   :  { %v910_v52 = vpop.f32.mrb[11].mxu0 }
 0x872   :  { %1763 = vmatprep.mubr.msk.f32.mxu1 %vm473_vm4, %v910_v52 }
 0x873   :  { %1764 = vmatmul.mubr.msk.f32.vlgmr.msra.gmra.mrb[12].mxu1 %vm473_vm4, %v1758_v51 }
 0x874   :  { %v1772_v53 = vpop.f32.mrb[12].mxu0  ;;  %1777 = vmatprep.mubr.msk.f32.mxu1 %vm473_vm4, %v2151_v2 }
 0x875   :  { %v1099_v54 = vmul.f32 %v1772_v53, %v2158_v3  ;;  %v1089_v55 = vpop.f32.mrb[13].mxu0 }
 0x876   :  { %v1098_v56 = vmul.f32 %v1089_v55, %v2163_v4 }
 0x878   :  { %v1871_v57 = vpack.c.bf16 %v1099_v54, %v1098_v56 }
 0x87a   :  { %1873 = vmatprep.subr.msk.bf16.mxu1 %vm2169_vm6, %v1871_v57 }
 0x87b   :  { %1876 = vmatpush3.bf16.xpose.msk.msra.mxu1 %vm2169_vm6, %v1871_v57 }
 0x87c   :  { %1890 = vmatprep.subr.bf16.mxu1 %v1871_v57 }
 0x882   :  { %1778 = vmatmul.mubr.msk.f32.vlgmr.msra.gmra.mrb[14].mxu1 %vm473_vm4, %v2180_v10 }
 0x883   :  { %1892 = vmatpush3.bf16.msra.mxu1 %v1871_v57  ;;  %1780 = vmatprep.mubr.msk.f32.mxu1 %vm473_vm4, %v2185_v13 }
 0x886   :  { %1781 = vmatmul.mubr.msk.f32.gmra.mrb[16].mxu1 %vm473_vm4, %v2194_v16 }
 0x946   :  { %v1765_v58 = vpop.f32.mrb[12].mxu1 }
 0x947   :  { %v1003_v59 = vadd.f32 %v1765_v58, %v1577_v15  ;;  %v997_v60 = vpop.f32.mrb[13].mxu1 }
 0x948   :  { %v998_v61 = vadd.f32 %v1577_v15, %v997_v60 }
 0x949   :  { %1007 = vst.msk [vmem:[#allocation3 + $0x8] sm:$0xff] %vm473_vm4, %v1003_v59 }
 0x94a   :  { %1006 = vst.msk [vmem:[#allocation3] sm:$0xff] %vm473_vm4, %v998_v61 }
 0x955   :  { %v1779_v62 = vpop.f32.mrb[14].mxu1 }
 0x956   :  { %v1172_v63 = vpop.f32.mrb[15].mxu1 }
 0x957   :  { %v1877_v0 = vpack.c.bf16 %v1779_v62, %v1172_v63 }
 0x959   :  { %v1782_v1 = vpop.f32.mrb[16].mxu1  ;;  %1878 = vmatprep.subr.bf16.mxu0 %v1877_v0 }
 0x95a   :  { %v1182_v2 = vpop.f32.mrb[17].mxu1  ;;  %1880 = vmatpush3.bf16.msra.mxu0 %v1877_v0 }
 0x95b   :  { %v1881_v3 = vpack.c.bf16 %v1782_v1, %v1182_v2 }
 0x95d   :  { %1882 = vmatprep.subr.bf16.mxu0 %v1881_v3 }
 0x95e   :  { %1884 = vmatpush3.bf16.msra.mxu0 %v1881_v3 }
 0x95f   :  { %1886 = vmatprep.subr.bf16.mxu0 %v2208_v29 }
 0x961   :  { %1792 = vmatmul.mubr.msk.f32.vlgmr.msra.gmra.mrb[14].mxu0 %vm53_vm0, %v2075_v14 }
 0x962   :  { %1888 = vmatpush3.bf16.msra.mxu0 %v2208_v29 }
 0x963   :  { %1894 = vmatprep.subr.bf16.mxu0 %v2226_v42 }
 0xa34   :  { %v1793_v4 = vpop.f32.mrb[14].mxu0 }
 0xa35   :  { %v1263_v5 = vpop.f32.mrb[15].mxu0  ;;  %v1275_v12 = vsel %vm473_vm4, %v1793_v4, -inf }
 0xa36   :  { %1276 = vmax.xlane.f32.xlu0 %v1275_v12  ;;  %v1272_v6 = vsel %vm473_vm4, %v1263_v5, -inf }
 0xa37   :  { %1273 = vmax.xlane.f32.xlu1 %v1272_v6 }
 0xac3   :  { %v1277_v7 = vpop.xlane.xlu0 %1276 }
 0xac4   :  { %v1279_v8 = vsub.f32 %v1793_v4, %v1277_v7  ;;  %v1274_v9 = vpop.xlane.xlu1 %1273 }
 0xac5   :  { %v1278_v10 = vsub.f32 %v1263_v5, %v1274_v9 }
 0xac6   :  { %v1282_v13 = vmul.f32 1.442695, %v1279_v8 }
 0xac7   :  { %v1280_v16 = vmul.f32 1.442695, %v1278_v10 }
 0xac9   :  { %1925 = vpow2.f32 %v1280_v16 }
 0xaca   :  { %1927 = vpow2.f32 %v1282_v13 }
 0xad3   :  { %v1926_v14 = vpop.eup %1925 }
 0xad4   :  { %v1928_v17 = vpop.eup %1927  ;;  %1798 = vmatprep.mubr.msk.f32.mxu0 %vm473_vm4, %v1926_v14 }
 0xad5   :  { %1799 = vmatmul.mubr.msk.f32.vlgmr.msra.gmra.mrb[16].mxu0 %vm473_vm4, %v1928_v17 }
 0xad6   :  { %1896 = vmatpush3.bf16.msra.mxu0 %v2226_v42 }
 0xba8   :  { %v1800_v18 = vpop.f32.mrb[16].mxu0 }
 0xba9   :  { %1929 = vrcp.f32 %v1800_v18  ;;  %v1356_v19 = vpop.f32.mrb[17].mxu0 }
 0xbaa   :  { %1931 = vrcp.f32 %v1356_v19 }
 0xbb3   :  { %v1930_v20 = vpop.eup %1929 }
 0xbb4   :  { %v1932_v21 = vpop.eup %1931  ;;  %v1368_v23 = vmul.f32 %v1930_v20, %v1928_v17 }
 0xbb5   :  { %v1367_v22 = vmul.f32 %v1932_v21, %v1926_v14 }
 0xbb7   :  { %1805 = vmatprep.mubr.msk.f32.mxu1 %vm473_vm4, %v1367_v22 }
 0xbb8   :  { %1806 = vmatmul.mubr.msk.f32.vlgmr.msra.gmra.mrb[18].mxu1 %vm473_vm4, %v1368_v23 }
 0xc8b   :  { %v1807_v24 = vpop.f32.mrb[18].mxu1 }
 0xc8c   :  { %v1441_v25 = vpop.f32.mrb[19].mxu1 }
 0xc8d   :  { %1812 = vmatprep.mubr.msk.f32.mxu0 %vm473_vm4, %v1441_v25 }
 0xc8e   :  { %1813 = vmatmul.mubr.msk.f32.vlgmr.msra.gmra.mrb[18].mxu0 %vm473_vm4, %v1807_v24 }
 0xd61   :  { %v1814_v26 = vpop.f32.mrb[18].mxu0 }
 0xd62   :  { %v1528_v27 = vadd.f32 %v1814_v26, %v1577_v15  ;;  %v1522_v28 = vpop.f32.mrb[19].mxu0 }
 0xd63   :  { %v1523_v29 = vadd.f32 %v1577_v15, %v1522_v28 }
 0xd64   :  { %1532 = vst.msk [vmem:[#allocation3 + $0x18] sm:$0xff] %vm473_vm4, %v1528_v27 }
 0xd65   :  { %1531 = vst.msk [vmem:[#allocation3 + $0x10] sm:$0xff] %vm473_vm4, %v1523_v29 }
 0xd66   :  { %1944 = shalt.err (!%p1941_p4)
}
 0xd67   :  { %s1945_s2 = scalar_lea.hbm %s2298_s13, 512 }
 0xd68   :  { %p1946_p5 = scmp.ne.s32.totalorder %s2298_s13, %s1945_s2  ;;  %p1949_p6 = scmp.lt.u32.totalorder %s1945_s2, %s2298_s13 }
 0xd6a   :  { %p1951_p7 = pnand %p1949_p6, %p1946_p5 }
 0xd6c   :  { %1954 = shalt.err (!%p1951_p7)
}
 0xd6d   :  { %s1965_s9 = smov 128   ;;  %s1966_s0 = smov 8  }
 0xd6e   :  { %1544 = dma.vmem_to_hbm [thread:$0]  %s1539_s5, 512, %s2298_s13, [#allocation4], %s1965_s9, %s1965_s9, %s1966_s0  }
 0xd6f   :  { %1955 = dma.done.wait [#allocation4], 512  }
 0xd70   :  { %1956 = vsyncadd [#allocation4], 4294966784 }
 0xd71   :  { %1548 = vsyncpa [#allocation4], 1 }

</bundles_post_ra>
